<compile_context>
chip_gen: v5e
topology: v5e:2x2
jax: 0.10.0
libtpu: 0.0.40
codegen_flags: <defaults>
</compile_context>

<pallas_src>
import jax
import jax.numpy as jnp
from jax.experimental import pallas as pl
from jax.experimental.pallas import tpu as pltpu


# --------------------------------------------------------------------------
# Kernel
# --------------------------------------------------------------------------
def _bahdanau_kernel(qp_ref, enc_ref, wk_ref, wv_ref, out_ref):
    """One batch tile per grid step.

    qp_ref : (TILE_B, H)    hidden[-1] @ W_Q^T + b_Q + b_K   (f32, hoisted)
    enc_ref: (TILE_B, T, H) encoder outputs                   (matmul dtype)
    wk_ref : (H, H)         W_K^T                             (matmul dtype)
    wv_ref : (1, H)         w_V row vector                    (f32)
    out_ref: (TILE_B, H)    context vectors
    """
    tb, t, h = enc_ref.shape
    enc = enc_ref[...]                                        # (TB, T, H)

    # K-projection as ONE fat MXU matmul: (TB*T, H) @ (H, H), f32 accumulate.
    kp = jnp.dot(enc.reshape(tb * t, h), wk_ref[...],
                 preferred_element_type=jnp.float32).reshape(tb, t, h)

    # Additive energies; element-wise math stays f32 (v5e: no bf16 VPU/EUP).
    # qp already carries b_Q + b_K (folded in the wrapper).
    e = jnp.tanh(kp + qp_ref[...][:, None, :])                # (TB, T, H)

    # Lane-dense scores: contract H, leave T on the lane axis.
    # b_V is dropped: it cancels in the softmax.
    scores = jnp.sum(e * wv_ref[...], axis=2)                 # (TB, T)

    # Numerically stable softmax along the lane (T) axis.
    m = jnp.max(scores, axis=1, keepdims=True)                # (TB, 1)
    p = jnp.exp(scores - m)                                   # (TB, T)
    w = p / jnp.sum(p, axis=1, keepdims=True)                 # (TB, T)

    # Context on the MXU: batched (1, T) @ (T, H) per batch row.
    ctx = jnp.einsum("bqt,bth->bqh", w[:, None, :].astype(enc.dtype), enc,
                     preferred_element_type=jnp.float32)      # (TB, 1, H)

    out_ref[...] = ctx[:, 0, :].astype(out_ref.dtype)


# --------------------------------------------------------------------------
# Tiling / VMEM sizing helpers
# --------------------------------------------------------------------------
def _vmem_estimate_bytes(tile_b, T, H, enc_itemsize):
    enc_bufs = 2 * tile_b * T * H * enc_itemsize          # double-buffered enc tile
    intermediates = 2 * tile_b * T * H * 4                 # kp / e in f32
    small = 4 * tile_b * H * 4                             # qp in + ctx out buffers
    weights = 2 * (H * H * enc_itemsize + H * 4)           # worst case: 2 buffers
    return enc_bufs + intermediates + small + weights


def _pick_tile_b(B, T, H, enc_itemsize, *,
                 vmem_budget=40 * 1024 * 1024, target_m=256):
    """How many batch rows each grid step processes.

    tile_b must divide B and be either == B or a multiple of 8 so the 2-D
    (tile_b, H) qp / output blocks satisfy the (8, 128)-or-full-dim rule.
    Pick the smallest tile reaching tile_b*T >= target_m (fat MXU M dim while
    keeping >=2 grid steps for v7x megacore when B allows) within a VMEM
    budget sized for v7x's 64 MiB.
    """
    cands = sorted(b for b in range(1, B + 1)
                   if B % b == 0 and (b == B or b % 8 == 0))
    fitting = [b for b in cands
               if _vmem_estimate_bytes(b, T, H, enc_itemsize) <= vmem_budget]
    if not fitting:
        return cands[0]
    for b in fitting:
        if b * T >= target_m:
            return b
    return fitting[-1]


# --------------------------------------------------------------------------
# pallas_call wrapper
# --------------------------------------------------------------------------
def _pallas_forward(qp, enc, wk_t, w_v, *, tile_b, out_dtype,
                    vmem_limit_bytes, single_buffer_weights):
    B, H = qp.shape
    _, T, _ = enc.shape
    grid = (B // tile_b,)

    def _const_spec(shape):
        index_map = lambda b: (0,) * len(shape)
        if single_buffer_weights:
            # Constant index_map -> the second pipeline buffer is dead weight.
            return pl.BlockSpec(shape, index_map, pipeline_mode=pl.Buffered(1))
        return pl.BlockSpec(shape, index_map)

    return pl.pallas_call(
        _bahdanau_kernel,
        out_shape=jax.ShapeDtypeStruct((B, H), out_dtype),
        grid_spec=pltpu.PrefetchScalarGridSpec(
            num_scalar_prefetch=0,
            grid=grid,
            in_specs=[
                pl.BlockSpec((tile_b, H), lambda b: (b, 0)),        # qp
                pl.BlockSpec((tile_b, T, H), lambda b: (b, 0, 0)),  # encoder outs
                _const_spec((H, H)),                                # W_K^T
                _const_spec((1, H)),                                # w_V row
            ],
            out_specs=pl.BlockSpec((tile_b, H), lambda b: (b, 0)),
        ),
        compiler_params=pltpu.CompilerParams(
            dimension_semantics=("parallel",),
            vmem_limit_bytes=vmem_limit_bytes),
    )(qp, enc, wk_t, w_v)


def prepare_attention_params(params, matmul_dtype=jnp.bfloat16):
    """One-time glue (transposes / bias folding / casts), hoisted out of the
    per-step forward call (a decoder loop calls attention every step)."""
    hidden_dim = params["w_Q"]["w"].shape[0]
    matmul_dtype = jnp.dtype(matmul_dtype)
    return {
        "wq_t": jnp.transpose(params["w_Q"]["w"]).astype(jnp.float32),   # (H, H)
        "wk_t": jnp.transpose(params["w_K"]["w"]).astype(matmul_dtype),  # (H, H)
        # b_Q and b_K both broadcast over T -> fold into the hoisted query
        # projection.  b_V cancels in the softmax and is dropped entirely.
        "q_bias": (params["w_Q"]["b"] + params["w_K"]["b"])
                  .astype(jnp.float32).reshape(1, hidden_dim),
        "w_v": params["w_V"]["w"].reshape(1, hidden_dim).astype(jnp.float32),
        "matmul_dtype": matmul_dtype,
    }


def bahdanau_attention_pallas(prepared, hidden, encoder_outputs, *, tile_b=None):
    """hidden: (L, B, H); encoder_outputs: (B, T, H).  Returns (B, 1, H)."""
    L, B, H = hidden.shape
    Be, T, He = encoder_outputs.shape
    assert (B, H) == (Be, He)
    mm_dtype = prepared["matmul_dtype"]

    # Hoisted, T-independent query projection: one (B, H) @ (H, H) XLA matmul.
    hid = hidden[-1].astype(jnp.float32)                       # (B, H)
    qp = hid @ prepared["wq_t"] + prepared["q_bias"]           # (B, H) f32

    enc_mm = encoder_outputs.astype(mm_dtype)                  # MXU operand

    if tile_b is None:
        tile_b = _pick_tile_b(B, T, H, mm_dtype.itemsize)
    assert B % tile_b == 0

    est = _vmem_estimate_bytes(tile_b, T, H, mm_dtype.itemsize)
    vmem_limit = int(min(64 * 1024 * 1024, max(16 * 1024 * 1024, 2 * est)))

    use_single_buffer = hasattr(pl, "Buffered")
    try:
        ctx = _pallas_forward(qp, enc_mm, prepared["wk_t"], prepared["w_v"],
                              tile_b=tile_b, out_dtype=encoder_outputs.dtype,
                              vmem_limit_bytes=vmem_limit,
                              single_buffer_weights=use_single_buffer)
    except Exception:
        if not use_single_buffer:
            raise
        # pipeline_mode=pl.Buffered(1) rejected on this JAX/backend; fall back
        # to default double-buffered weight blocks (semantically identical).
        ctx = _pallas_forward(qp, enc_mm, prepared["wk_t"], prepared["w_v"],
                              tile_b=tile_b, out_dtype=encoder_outputs.dtype,
                              vmem_limit_bytes=vmem_limit,
                              single_buffer_weights=False)

    return ctx.reshape(B, 1, H)


# --------------------------------------------------------------------------
# Parameter init + pure-JAX reference (mirrors the PyTorch forward)
# --------------------------------------------------------------------------
def init_attention_params(key, hidden_dim):
    bound = 1.0 / jnp.sqrt(jnp.float32(hidden_dim))
    key, k1, k2, k3, k4, k5, k6 = jax.random.split(key, 7)
    return {
        "w_Q": {"w": jax.random.uniform(k1, (hidden_dim, hidden_dim),
                                        minval=-bound, maxval=bound, dtype=jnp.float32),
                "b": jax.random.uniform(k2, (hidden_dim,),
                                        minval=-bound, maxval=bound, dtype=jnp.float32)},
        "w_K": {"w": jax.random.uniform(k3, (hidden_dim, hidden_dim),
                                        minval=-bound, maxval=bound, dtype=jnp.float32),
                "b": jax.random.uniform(k4, (hidden_dim,),
                                        minval=-bound, maxval=bound, dtype=jnp.float32)},
        "w_V": {"w": jax.random.uniform(k5, (1, hidden_dim),
                                        minval=-bound, maxval=bound, dtype=jnp.float32),
                "b": jax.random.uniform(k6, (1,),
                                        minval=-bound, maxval=bound, dtype=jnp.float32)},
    }


def bahdanau_attention_ref(params, hidden, encoder_outputs):
    q = hidden[-1][:, None, :]                                      # (B, 1, H)
    wq, bq = params["w_Q"]["w"], params["w_Q"]["b"]
    wk, bk = params["w_K"]["w"], params["w_K"]["b"]
    wv, bv = params["w_V"]["w"], params["w_V"]["b"]
    qp = jnp.einsum("bih,oh->bio", q, wq) + bq                      # (B, 1, H)
    kp = jnp.einsum("bth,oh->bto", encoder_outputs, wk) + bk        # (B, T, H)
    scores = jnp.einsum("bth,oh->bto", jnp.tanh(qp + kp), wv) + bv  # (B, T, 1)
    w = jax.nn.softmax(scores, axis=1)                              # (B, T, 1)
    w = jnp.transpose(w, (0, 2, 1))                                 # (B, 1, T)
    return jnp.einsum("bit,bth->bih", w, encoder_outputs)           # (B, 1, H)


if __name__ == "__main__":
    HIDDEN, LAYERS = 32, 2
    B, T = 2, 8

    key = jax.random.PRNGKey(0)
    key, k_params, k_hid, k_enc = jax.random.split(key, 4)
    params = init_attention_params(k_params, HIDDEN)
    hidden = jax.random.normal(k_hid, (LAYERS, B, HIDDEN), dtype=jnp.float32)
    encoder_outputs = jax.random.normal(k_enc, (B, T, HIDDEN), dtype=jnp.float32)

    ref = bahdanau_attention_ref(params, hidden, encoder_outputs)

    # f32 MXU path: tight correctness check.
    prep_f32 = prepare_attention_params(params, matmul_dtype=jnp.float32)
    out_f32 = bahdanau_attention_pallas(prep_f32, hidden, encoder_outputs)
    jax.block_until_ready(out_f32)
    assert out_f32.shape == (B, 1, HIDDEN)
    assert jnp.allclose(out_f32, ref, atol=2e-3, rtol=2e-3), (
        float(jnp.max(jnp.abs(out_f32 - ref))))

    # bf16 MXU path (default): matmuls feed the MXU in bf16, element-wise math
    # stays f32; tolerance loosened accordingly.
    prep_bf16 = prepare_attention_params(params)
    out_bf16 = bahdanau_attention_pallas(prep_bf16, hidden, encoder_outputs)
    jax.block_until_ready(out_bf16)
    assert out_bf16.shape == (B, 1, HIDDEN)
    assert jnp.allclose(out_bf16, ref, atol=2e-2, rtol=2e-2), (
        float(jnp.max(jnp.abs(out_bf16 - ref))))

    print("KERNEL_OK")
</pallas_src>

<mosaic_0001>
module attributes {stable_mosaic.version = 11 : i64} {
  func.func @_bahdanau_kernel(%arg0: i32, %arg1: memref<2x32xf32, #tpu.memory_space<vmem>>, %arg2: memref<2x8x32xf32, #tpu.memory_space<vmem>>, %arg3: memref<32x32xf32, #tpu.memory_space<vmem>>, %arg4: memref<1x32xf32, #tpu.memory_space<vmem>>, %arg5: memref<2x32xf32, #tpu.memory_space<vmem>>) attributes {dimension_semantics = [#tpu.dimension_semantics<parallel>], iteration_bounds = array<i64: 1>, scalar_prefetch = 0 : i64, scratch_operands = 0 : i64, tpu.core_type = #tpu.core_type<tc>, window_params = [{transform_indices = @transform_0, window_bounds = array<i64: 2, 32>}, {transform_indices = @transform_1, window_bounds = array<i64: 2, 8, 32>}, {pipeline_mode = #tpu.pipeline_mode<synchronous>, transform_indices = @transform_2, window_bounds = array<i64: 32, 32>}, {pipeline_mode = #tpu.pipeline_mode<synchronous>, transform_indices = @transform_3, window_bounds = array<i64: 1, 32>}, {transform_indices = @transform_4, window_bounds = array<i64: 2, 32>}]} {
    %c0 = arith.constant 0 : index
    %c0_0 = arith.constant 0 : index
    %c0_1 = arith.constant 0 : index
    %0 = vector.load %arg2[%c0, %c0_0, %c0_1] : memref<2x8x32xf32, #tpu.memory_space<vmem>>, vector<2x8x32xf32>
    %1 = vector.shape_cast %0 : vector<2x8x32xf32> to vector<16x32xf32>
    %c0_2 = arith.constant 0 : index
    %c0_3 = arith.constant 0 : index
    %2 = vector.load %arg3[%c0_2, %c0_3] : memref<32x32xf32, #tpu.memory_space<vmem>>, vector<32x32xf32>
    %cst = arith.constant dense<0.000000e+00> : vector<16x32xf32>
    %3 = tpu.matmul %1, %2, %cst {dimension_numbers = #tpu.dot_dimension_numbers<[1], [0], [0], [1], [0, 0, 1, 1], [], []>} : vector<16x32xf32>, vector<32x32xf32>, vector<16x32xf32> -> vector<16x32xf32>
    %4 = vector.shape_cast %3 : vector<16x32xf32> to vector<2x8x32xf32>
    %c0_4 = arith.constant 0 : index
    %c0_5 = arith.constant 0 : index
    %5 = vector.load %arg1[%c0_4, %c0_5] : memref<2x32xf32, #tpu.memory_space<vmem>>, vector<2x32xf32>
    %6 = vector.shape_cast %5 : vector<2x32xf32> to vector<2x1x32xf32>
    %7 = vector.broadcast %6 : vector<2x1x32xf32> to vector<2x8x32xf32>
    %8 = arith.addf %4, %7 : vector<2x8x32xf32>
    %9 = math.tanh %8 : vector<2x8x32xf32>
    %c0_6 = arith.constant 0 : index
    %c0_7 = arith.constant 0 : index
    %10 = vector.load %arg4[%c0_6, %c0_7] : memref<1x32xf32, #tpu.memory_space<vmem>>, vector<1x32xf32>
    %11 = vector.shape_cast %10 : vector<1x32xf32> to vector<1x1x32xf32>
    %12 = vector.broadcast %11 : vector<1x1x32xf32> to vector<2x8x32xf32>
    %13 = arith.mulf %9, %12 : vector<2x8x32xf32>
    %cst_8 = arith.constant dense<0.000000e+00> : vector<2x8xf32>
    %14 = vector.multi_reduction <add>, %13, %cst_8 [2] : vector<2x8x32xf32> to vector<2x8xf32>
    %cst_9 = arith.constant dense<0xFF800000> : vector<2xf32>
    %15 = vector.multi_reduction <maximumf>, %14, %cst_9 [1] : vector<2x8xf32> to vector<2xf32>
    %16 = vector.shape_cast %15 : vector<2xf32> to vector<2x1xf32>
    %17 = vector.broadcast %16 : vector<2x1xf32> to vector<2x8xf32>
    %18 = arith.subf %14, %17 : vector<2x8xf32>
    %19 = math.exp %18 : vector<2x8xf32>
    %cst_10 = arith.constant dense<0.000000e+00> : vector<2xf32>
    %20 = vector.multi_reduction <add>, %19, %cst_10 [1] : vector<2x8xf32> to vector<2xf32>
    %21 = vector.shape_cast %20 : vector<2xf32> to vector<2x1xf32>
    %22 = vector.broadcast %21 : vector<2x1xf32> to vector<2x8xf32>
    %23 = arith.divf %19, %22 : vector<2x8xf32>
    %24 = vector.shape_cast %23 : vector<2x8xf32> to vector<2x1x8xf32>
    "tpu.trace_start"() <{level = 10 : i32, message = "bqt,bth->bqh"}> : () -> ()
    %cst_11 = arith.constant dense<0.000000e+00> : vector<2x1x32xf32>
    %25 = tpu.matmul %24, %0, %cst_11 {dimension_numbers = #tpu.dot_dimension_numbers<[2], [1], [1], [2], [0, 0, 0, 1, 1, 2], [0], [0]>} : vector<2x1x8xf32>, vector<2x8x32xf32>, vector<2x1x32xf32> -> vector<2x1x32xf32>
    "tpu.trace_stop"() : () -> ()
    %26 = vector.shape_cast %25 : vector<2x1x32xf32> to vector<2x32xf32>
    %c0_12 = arith.constant 0 : index
    %c0_13 = arith.constant 0 : index
    %27 = vector.load %arg5[%c0_12, %c0_13] : memref<2x32xf32, #tpu.memory_space<vmem>>, vector<2x32xf32>
    tpu.vector_store %arg5[%c0_12, %c0_13], %26 {strides = array<i32>} : memref<2x32xf32, #tpu.memory_space<vmem>>, vector<2x32xf32>,
    return
  }
  func.func @transform_0(%arg0: i32) -> (i32, i32) {
    %c0_i32 = arith.constant 0 : i32
    %c0_i32_0 = arith.constant 0 : i32
    return %arg0, %c0_i32 : i32, i32
  }
  func.func @transform_1(%arg0: i32) -> (i32, i32, i32) {
    %c0_i32 = arith.constant 0 : i32
    %c0_i32_0 = arith.constant 0 : i32
    %c0_i32_1 = arith.constant 0 : i32
    return %arg0, %c0_i32, %c0_i32_0 : i32, i32, i32
  }
  func.func @transform_2(%arg0: i32) -> (i32, i32) {
    %c0_i32 = arith.constant 0 : i32
    %c0_i32_0 = arith.constant 0 : i32
    %c0_i32_1 = arith.constant 0 : i32
    return %c0_i32, %c0_i32_0 : i32, i32
  }
  func.func @transform_3(%arg0: i32) -> (i32, i32) {
    %c0_i32 = arith.constant 0 : i32
    %c0_i32_0 = arith.constant 0 : i32
    %c0_i32_1 = arith.constant 0 : i32
    return %c0_i32, %c0_i32_0 : i32, i32
  }
  func.func @transform_4(%arg0: i32) -> (i32, i32) {
    %c0_i32 = arith.constant 0 : i32
    %c0_i32_0 = arith.constant 0 : i32
    return %arg0, %c0_i32 : i32, i32
  }
}

module attributes {stable_mosaic.version = 11 : i64} {
  func.func @_bahdanau_kernel(%arg0: i32, %arg1: memref<2x32xf32, #tpu.memory_space<vmem>>, %arg2: memref<2x8x32xf32, #tpu.memory_space<vmem>>, %arg3: memref<32x32xf32, #tpu.memory_space<vmem>>, %arg4: memref<1x32xf32, #tpu.memory_space<vmem>>, %arg5: memref<2x32xf32, #tpu.memory_space<vmem>>) attributes {dimension_semantics = [#tpu.dimension_semantics<parallel>], iteration_bounds = array<i64: 1>, scalar_prefetch = 0 : i64, scratch_operands = 0 : i64, tpu.core_type = #tpu.core_type<tc>, window_params = [{transform_indices = @transform_0, window_bounds = array<i64: 2, 32>}, {transform_indices = @transform_1, window_bounds = array<i64: 2, 8, 32>}, {pipeline_mode = #tpu.pipeline_mode<synchronous>, transform_indices = @transform_2, window_bounds = array<i64: 32, 32>}, {pipeline_mode = #tpu.pipeline_mode<synchronous>, transform_indices = @transform_3, window_bounds = array<i64: 1, 32>}, {transform_indices = @transform_4, window_bounds = array<i64: 2, 32>}]} {
    %c0 = arith.constant 0 : index
    %c0_0 = arith.constant 0 : index
    %c0_1 = arith.constant 0 : index
    %0 = vector.load %arg2[%c0, %c0_0, %c0_1] : memref<2x8x32xf32, #tpu.memory_space<vmem>>, vector<2x8x32xf32>
    %1 = vector.shape_cast %0 : vector<2x8x32xf32> to vector<16x32xf32>
    %c0_2 = arith.constant 0 : index
    %c0_3 = arith.constant 0 : index
    %2 = vector.load %arg3[%c0_2, %c0_3] : memref<32x32xf32, #tpu.memory_space<vmem>>, vector<32x32xf32>
    %cst = arith.constant dense<0.000000e+00> : vector<16x32xf32>
    %3 = tpu.matmul %1, %2, %cst {dimension_numbers = #tpu.dot_dimension_numbers<[1], [0], [0], [1], [0, 0, 1, 1], [], []>} : vector<16x32xf32>, vector<32x32xf32>, vector<16x32xf32> -> vector<16x32xf32>
    %4 = vector.shape_cast %3 : vector<16x32xf32> to vector<2x8x32xf32>
    %c0_4 = arith.constant 0 : index
    %c0_5 = arith.constant 0 : index
    %5 = vector.load %arg1[%c0_4, %c0_5] : memref<2x32xf32, #tpu.memory_space<vmem>>, vector<2x32xf32>
    %6 = vector.shape_cast %5 : vector<2x32xf32> to vector<2x1x32xf32>
    %7 = vector.broadcast %6 : vector<2x1x32xf32> to vector<2x8x32xf32>
    %8 = arith.addf %4, %7 : vector<2x8x32xf32>
    %9 = math.tanh %8 : vector<2x8x32xf32>
    %c0_6 = arith.constant 0 : index
    %c0_7 = arith.constant 0 : index
    %10 = vector.load %arg4[%c0_6, %c0_7] : memref<1x32xf32, #tpu.memory_space<vmem>>, vector<1x32xf32>
    %11 = vector.shape_cast %10 : vector<1x32xf32> to vector<1x1x32xf32>
    %12 = vector.broadcast %11 : vector<1x1x32xf32> to vector<2x8x32xf32>
    %13 = arith.mulf %9, %12 : vector<2x8x32xf32>
    %cst_8 = arith.constant dense<0.000000e+00> : vector<2x8xf32>
    %14 = vector.multi_reduction <add>, %13, %cst_8 [2] : vector<2x8x32xf32> to vector<2x8xf32>
    %cst_9 = arith.constant dense<0xFF800000> : vector<2xf32>
    %15 = vector.multi_reduction <maximumf>, %14, %cst_9 [1] : vector<2x8xf32> to vector<2xf32>
    %16 = vector.shape_cast %15 : vector<2xf32> to vector<2x1xf32>
    %17 = vector.broadcast %16 : vector<2x1xf32> to vector<2x8xf32>
    %18 = arith.subf %14, %17 : vector<2x8xf32>
    %19 = math.exp %18 : vector<2x8xf32>
    %cst_10 = arith.constant dense<0.000000e+00> : vector<2xf32>
    %20 = vector.multi_reduction <add>, %19, %cst_10 [1] : vector<2x8xf32> to vector<2xf32>
    %21 = vector.shape_cast %20 : vector<2xf32> to vector<2x1xf32>
    %22 = vector.broadcast %21 : vector<2x1xf32> to vector<2x8xf32>
    %23 = arith.divf %19, %22 : vector<2x8xf32>
    %24 = vector.shape_cast %23 : vector<2x8xf32> to vector<2x1x8xf32>
    "tpu.trace_start"() <{level = 10 : i32, message = "bqt,bth->bqh"}> : () -> ()
    %cst_11 = arith.constant dense<0.000000e+00> : vector<2x1x32xf32>
    %25 = tpu.matmul %24, %0, %cst_11 {dimension_numbers = #tpu.dot_dimension_numbers<[2], [1], [1], [2], [0, 0, 0, 1, 1, 2], [0], [0]>} : vector<2x1x8xf32>, vector<2x8x32xf32>, vector<2x1x32xf32> -> vector<2x1x32xf32>
    "tpu.trace_stop"() : () -> ()
    %26 = vector.shape_cast %25 : vector<2x1x32xf32> to vector<2x32xf32>
    %c0_12 = arith.constant 0 : index
    %c0_13 = arith.constant 0 : index
    %27 = vector.load %arg5[%c0_12, %c0_13] : memref<2x32xf32, #tpu.memory_space<vmem>>, vector<2x32xf32>
    tpu.vector_store %arg5[%c0_12, %c0_13], %26 {strides = array<i32>} : memref<2x32xf32, #tpu.memory_space<vmem>>, vector<2x32xf32>,
    return
  }
  func.func @transform_0(%arg0: i32) -> (i32, i32) {
    %c0_i32 = arith.constant 0 : i32
    %c0_i32_0 = arith.constant 0 : i32
    return %arg0, %c0_i32 : i32, i32
  }
  func.func @transform_1(%arg0: i32) -> (i32, i32, i32) {
    %c0_i32 = arith.constant 0 : i32
    %c0_i32_0 = arith.constant 0 : i32
    %c0_i32_1 = arith.constant 0 : i32
    return %arg0, %c0_i32, %c0_i32_0 : i32, i32, i32
  }
  func.func @transform_2(%arg0: i32) -> (i32, i32) {
    %c0_i32 = arith.constant 0 : i32
    %c0_i32_0 = arith.constant 0 : i32
    %c0_i32_1 = arith.constant 0 : i32
    return %c0_i32, %c0_i32_0 : i32, i32
  }
  func.func @transform_3(%arg0: i32) -> (i32, i32) {
    %c0_i32 = arith.constant 0 : i32
    %c0_i32_0 = arith.constant 0 : i32
    %c0_i32_1 = arith.constant 0 : i32
    return %c0_i32, %c0_i32_0 : i32, i32
  }
  func.func @transform_4(%arg0: i32) -> (i32, i32) {
    %c0_i32 = arith.constant 0 : i32
    %c0_i32_0 = arith.constant 0 : i32
    return %arg0, %c0_i32 : i32, i32
  }
}

</mosaic_0001>

<bundles_post_ra>
// kernel: tpu_custom_call.1
= control target key start
LH: loop header
LB: loop body
LE: loop exit
PB: predicated region body
PF: predicated region fallthrough
CT: control target
= control target key end

     0   :  { %9 = vsyncpa [#allocation3], 0  ;;  %s473_s0 = inlined_call_operand.hbm [shape: f32[2,32], index: 0, kind: input, shape index: {}]   ;;  %s474_s1 = inlined_call_operand.hbm [shape: f32[2,8,32], index: 1, kind: input, shape index: {}]   ;;  %s475_s2 = inlined_call_operand.hbm [shape: f32[32,32], index: 2, kind: input, shape index: {}]   ;;  %s476_s3 = inlined_call_operand.vmem [shape: f32[1,32], index: 3, kind: input, shape index: {}]   ;;  %s477_s4 = inlined_call_operand.hbm [shape: f32[2,32], index: 4, kind: output, shape index: {}]  }
   0x1   :  { %10 = vsyncpa [#allocation6], 0  ;;  %s27_s17 = sshll.u32 %s474_s1, 4  ;;  %s28_s17 = int_to_ptr.hbm [resolvable:$true] %s27_s17 }
   0x2   :  { %11 = vsyncpa [#allocation4], 0  ;;  %s409_s18 = smov [#allocation5]   ;;  %s17_s22 = sshll.u32 %s473_s0, 4  ;;  %s18_s22 = int_to_ptr.hbm [resolvable:$true] %s17_s22 }
   0x3   :  { %s29_s19 = sshll.u32 %s409_s18, 4  ;;  %s410_s23 = smov 128   ;;  %s30_s19 = int_to_ptr.vmem [resolvable:$true] %s29_s19 }
   0x4   :  { %s411_s24 = smov 8   ;;  %s412_s25 = smov [#allocation2]  }
   0x5   :  { %35 = dma.hbm_to_vmem [thread:$0]  %s28_s17, 256, %s30_s19, [#allocation6], %s410_s23, %s410_s23, %s411_s24  }
   0x6   :  { %s19_s26 = sshll.u32 %s412_s25, 4  ;;  %s40_s29 = sshll.u32 %s475_s2, 4  ;;  %s20_s26 = int_to_ptr.vmem [resolvable:$true] %s19_s26  ;;  %s41_s29 = int_to_ptr.hbm [resolvable:$true] %s40_s29 }
   0x7   :  { %22 = dma.hbm_to_vmem [thread:$0]  %s18_s22, 32, %s20_s26, [#allocation3]  }
   0x8   :  { %s413_s1 = smov [#allocation7]  }
   0x9   :  { %s42_s30 = sshll.u32 %s413_s1, 4  ;;  %s43_s30 = int_to_ptr.vmem [resolvable:$true] %s42_s30 }
   0xa   :  { %48 = dma.hbm_to_vmem [thread:$0]  %s41_s29, 512, %s43_s30, [#allocation6], %s410_s23, %s410_s23, %s411_s24  }
   0xb   :  { %403 = dma.done.wait [#allocation3], 32  }
   0xc   :  { %404 = vsyncadd [#allocation3], 4294967264 }
   0xd   :  { %405 = dma.done.wait [#allocation6], 768  }
   0xe   :  { %406 = vsyncadd [#allocation6], 4294966528  ;;  %v68_v0 = vld [vmem:[#allocation7 + $0x18] sm:$0xff]  ;;  %v67_v1 = vld [vmem:[#allocation7 + $0x10] sm:$0xff]  ;;  %vm69_vm0 = vcmask 261120   ;;  %v124_v22 = vlaneseq  ;;  %vm128_vm1 = vcmask 1041409  }
   0xf   :  { %88 = vmatpush.msra.mxu0 %v68_v0  ;;  %280 = vmatpush.msra.mxu3 %v68_v0  ;;  %v63_v2 = vld [vmem:[#allocation5] sm:$0xff]  ;;  %v64_v3 = vld [vmem:[#allocation5 + $0x8] sm:$0xff]  ;;  %v66_v4 = vld [vmem:[#allocation7 + $0x8] sm:$0xff]  ;;  %vm131_vm2 = vcmask 58368   ;;  %v414_v29 = vmov 0   ;;  %vm201_vm11 = vcmask 64512  }
  0x10   :  { %219 = vmatpush.msra.mxu1 %v63_v2  ;;  %246 = vmatpush.msra.mxu2 %v64_v3  ;;  %v65_v5 = vld [vmem:[#allocation7] sm:$0xff]  ;;  %v99_v6 = vld [vmem:[#allocation2] sm:$0x3]  ;;  %v457_v23 = vand.u32 127, %v124_v22  ;;  %s265_s8 = sshll.u32 %s477_s4, 4  ;;  %vm256_vm12 = vcmask 254976   ;;  %s266_s8 = int_to_ptr.hbm [resolvable:$true] %s265_s8 }
  0x11   :  { %89 = vmatpush.msra.mxu0 %v67_v1  ;;  %281 = vmatpush.msra.mxu3 %v67_v1  ;;  %v102_v7 = vperm.slane %v99_v6, 0  ;;  %v101_v8 = vrot.slane %v99_v6, 1  ;;  %v294_v13 = vld [vmem:[%s476_s3] ss:$0 sm:$0xff]  ;;  %s415_s3 = smov [#allocation8]  }
  0x12   :  { %292 = vset.pattern.permute.xlu2 %v414_v29  ;;  %291 = vset.pattern.permute.xlu1 %v414_v29  ;;  %s263_s5 = sshll.u32 %s415_s3, 4  ;;  %s264_s5 = int_to_ptr.vmem [resolvable:$true] %s263_s5 }
  0x13   :  { %90 = vmatpush.msra.mxu0 %v66_v4  ;;  %282 = vmatpush.msra.mxu3 %v66_v4  ;;  %v103_v11 = vperm.slane %v101_v8, 0 }
  0x14   :  { %293 = vset.pattern.permute.xlu0 %v414_v29 }
  0x15   :  { %91 = vmatpush.msra.mxu0 %v65_v5  ;;  %283 = vmatpush.msra.mxu3 %v65_v5 }
  0x16   :  { %276 = vmatmul.msk.f32.vlgmr.msra.gmra.mxu0 %vm69_vm0, %v63_v2  ;;  %277 = vmatmul.msk.f32.vlgmr.msra.gmra.mxu3 %vm69_vm0, %v64_v3 }
  0x93   :  { %v93_v9 = vpop.f32.mrf.mxu0 }
  0x94   :  { %v106_v10 = vadd.f32 %v102_v7, %v93_v9 }
  0x96   :  { %295 = vtanh.f32 %v106_v10 }
  0x99   :  { %v96_v12 = vpop.f32.mrf.mxu3 }
  0x9a   :  { %v107_v14 = vadd.f32 %v103_v11, %v96_v12 }
  0x9c   :  { %v296_v15 = vpop.eup %295  ;;  %297 = vtanh.f32 %v107_v14 }
  0x9d   :  { %v114_v16 = vmul.f32 %v296_v15, %v294_v13 }
  0x9f   :  { %v116_v17 = vsel %vm69_vm0, %v114_v16, 0.0 }
  0xa0   :  { %117 = vadd.xlane.f32.xlu0 %v116_v17 }
  0xa2   :  { %v298_v18 = vpop.eup %297 }
  0xa3   :  { %v115_v19 = vmul.f32 %v298_v18, %v294_v13 }
  0xa5   :  { %v119_v20 = vsel %vm69_vm0, %v115_v19, 0.0 }
  0xa8   :  { %120 = vadd.xlane.f32.xlu0 %v119_v20 }
 0x113   :  { %v118_v21 = vpop.xlane.xlu0 %117 }
 0x114   :  { %v126_v25 = vperm.slane %v118_v21, %v457_v23 }
 0x11b   :  { %v121_v24 = vpop.xlane.xlu0 %120 }
 0x11c   :  { %v127_v26 = vperm.slane %v121_v24, %v457_v23 }
 0x11e   :  { %v129_v27 = vsel %vm128_vm1, %v127_v26, %v126_v25 }
 0x11f   :  { %v132_v28 = vsel %vm131_vm2, %v129_v27, -inf }
 0x120   :  { %133 = vmax.xlane.f32.xlu1 %v132_v28 }
 0x193   :  { %v134_v30 = vpop.xlane.xlu1 %133 }
 0x194   :  { %v136_v31 = vperm.slane %v134_v30, 0  ;;  %v137_v32 = vperm.slane %v134_v30, 1 }
 0x196   :  { %v140_v33 = vsub.f32 %v118_v21, %v136_v31  ;;  %v141_v34 = vsub.f32 %v121_v24, %v137_v32 }
 0x198   :  { %v142_v35 = vmul.f32 1.442695, %v140_v33  ;;  %v144_v36 = vmul.f32 1.442695, %v141_v34 }
 0x19a   :  { %299 = vpow2.f32 %v142_v35 }
 0x19b   :  { %301 = vpow2.f32 %v144_v36 }
 0x1a0   :  { %v300_v37 = vpop.eup %299 }
 0x1a1   :  { %v302_v38 = vpop.eup %301  ;;  %149 = vperm.xlu1 %291, %v300_v37  }
 0x1a2   :  { %152 = vperm.xlu2 %292, %v302_v38  }
 0x1fc   :  { %v153_v39 = vpop.permute.xlu2 %152 }
 0x1fd   :  { %v155_v41 = vperm.slane %v153_v39, %v457_v23 }
 0x213   :  { %v150_v40 = vpop.permute.xlu1 %149 }
 0x214   :  { %v154_v42 = vperm.slane %v150_v40, %v457_v23 }
 0x216   :  { %v156_v43 = vsel %vm128_vm1, %v155_v41, %v154_v42 }
 0x217   :  { %v158_v44 = vsel %vm131_vm2, %v156_v43, 0.0 }
 0x218   :  { %159 = vadd.xlane.f32.xlu2 %v158_v44 }
 0x28b   :  { %v160_v45 = vpop.xlane.xlu2 %159 }
 0x28c   :  { %v162_v46 = vperm.slane %v160_v45, 0  ;;  %v163_v47 = vperm.slane %v160_v45, 1 }
 0x28e   :  { %303 = vrcp.f32 %v162_v46  ;;  %v177_v54 = vand.u32 2147483648, %v162_v46  ;;  %v192_v55 = vand.u32 2147483648, %v163_v47  ;;  %v175_v57 = vand.u32 2147483647, %v162_v46 }
 0x28f   :  { %305 = vrcp.f32 %v163_v47  ;;  %v190_v59 = vand.u32 2147483647, %v163_v47  ;;  %vm171_vm5 = vweird.f32 %v162_v46  ;;  %vm186_vm6 = vweird.f32 %v163_v47 }
 0x290   :  { %v178_v62 = vor.u32 1.1754944e-38, %v177_v54  ;;  %v193_v63 = vor.u32 1.1754944e-38, %v192_v55  ;;  %vm176_vm9 = vcmp.eq.f32.partialorder %v175_v57, 8.507059e+37 }
 0x291   :  { %vm191_vm10 = vcmp.eq.f32.partialorder %v190_v59, 8.507059e+37 }
 0x294   :  { %v304_v48 = vpop.eup %303 }
 0x295   :  { %v306_v49 = vpop.eup %305  ;;  %v167_v50 = vmul.f32 %v304_v48, %v162_v46  ;;  %vm172_vm3 = vweird.f32 %v304_v48 }
 0x296   :  { %v182_v51 = vmul.f32 %v306_v49, %v163_v47  ;;  %vm187_vm4 = vweird.f32 %v306_v49  ;;  %vm173_vm7 = vmor %vm171_vm5, %vm172_vm3 }
 0x297   :  { %v168_v52 = vsub.f32 1.0, %v167_v50  ;;  %vm188_vm8 = vmor %vm186_vm6, %vm187_vm4 }
 0x298   :  { %v183_v53 = vsub.f32 1.0, %v182_v51 }
 0x299   :  { %v169_v56 = vmul.f32 %v304_v48, %v168_v52 }
 0x29a   :  { %v184_v58 = vmul.f32 %v306_v49, %v183_v53 }
 0x29b   :  { %v170_v60 = vadd.f32 %v304_v48, %v169_v56 }
 0x29c   :  { %v185_v61 = vadd.f32 %v306_v49, %v184_v58 }
 0x29d   :  { %v174_v0 = vsel %vm173_vm7, %v304_v48, %v170_v60 }
 0x29e   :  { %v189_v1 = vsel %vm188_vm8, %v306_v49, %v185_v61  ;;  %v179_v2 = vsel %vm176_vm9, %v178_v62, %v174_v0 }
 0x29f   :  { %v194_v3 = vsel %vm191_vm10, %v193_v63, %v189_v1  ;;  %v180_v4 = vmul.f32 %v300_v37, %v179_v2 }
 0x2a0   :  { %v195_v5 = vmul.f32 %v302_v38, %v194_v3 }
 0x2a1   :  { %198 = vperm.xlu1 %291, %v180_v4  }
 0x2a2   :  { %226 = vperm.xlu0 %293, %v195_v5  }
 0x313   :  { %v199_v6 = vpop.permute.xlu1 %198 }
 0x314   :  { %v227_v7 = vpop.permute.xlu0 %226  ;;  %v200_v8 = vperm.slane %v199_v6, %v457_v23 }
 0x315   :  { %v228_v9 = vperm.slane %v227_v7, %v457_v23 }
 0x316   :  { %278 = vmatmul.msk.f32.vlgmr.msra.gmra.mxu1 %vm201_vm11, %v200_v8 }
 0x317   :  { %279 = vmatmul.msk.f32.vlgmr.msra.gmra.mxu2 %vm201_vm11, %v228_v9 }
 0x393   :  { %v221_v12 = vpop.f32.mrf.mxu1 }
 0x39a   :  { %v248_v10 = vpop.f32.mrf.mxu2 }
 0x39b   :  { %v253_v11 = vrot.slane %v248_v10, 7 }
 0x39d   :  { %v254_v13 = vsel %vm128_vm1, %v253_v11, %v221_v12 }
 0x39e   :  { %257 = vst.msk [vmem:[#allocation8] sm:$0x3] %vm256_vm12, %v254_v13 }
 0x39f   :  { %268 = dma.vmem_to_hbm [thread:$0]  %s264_s5, 32, %s266_s8, [#allocation4]  }
 0x3a0   :  { %407 = dma.done.wait [#allocation4], 32  }
 0x3a1   :  { %408 = vsyncadd [#allocation4], 4294967264 }
 0x3a2   :  { %273 = vsyncpa [#allocation3], 1 }
 0x3a3   :  { %274 = vsyncpa [#allocation6], 1 }
 0x3a4   :  { %275 = vsyncpa [#allocation4], 1 }

// kernel: tpu_custom_call.1
= control target key start
LH: loop header
LB: loop body
LE: loop exit
PB: predicated region body
PF: predicated region fallthrough
CT: control target
= control target key end

     0   :  { %9 = vsyncpa [#allocation3], 0  ;;  %s473_s0 = inlined_call_operand.hbm [shape: f32[2,32], index: 0, kind: input, shape index: {}]   ;;  %s474_s1 = inlined_call_operand.hbm [shape: f32[2,8,32], index: 1, kind: input, shape index: {}]   ;;  %s475_s2 = inlined_call_operand.hbm [shape: f32[32,32], index: 2, kind: input, shape index: {}]   ;;  %s476_s3 = inlined_call_operand.vmem [shape: f32[1,32], index: 3, kind: input, shape index: {}]   ;;  %s477_s4 = inlined_call_operand.hbm [shape: f32[2,32], index: 4, kind: output, shape index: {}]  }
   0x1   :  { %10 = vsyncpa [#allocation6], 0  ;;  %s27_s17 = sshll.u32 %s474_s1, 4  ;;  %s28_s17 = int_to_ptr.hbm [resolvable:$true] %s27_s17 }
   0x2   :  { %11 = vsyncpa [#allocation4], 0  ;;  %s409_s18 = smov [#allocation5]   ;;  %s17_s22 = sshll.u32 %s473_s0, 4  ;;  %s18_s22 = int_to_ptr.hbm [resolvable:$true] %s17_s22 }
   0x3   :  { %s29_s19 = sshll.u32 %s409_s18, 4  ;;  %s410_s23 = smov 128   ;;  %s30_s19 = int_to_ptr.vmem [resolvable:$true] %s29_s19 }
   0x4   :  { %s411_s24 = smov 8   ;;  %s412_s25 = smov [#allocation2]  }
   0x5   :  { %35 = dma.hbm_to_vmem [thread:$0]  %s28_s17, 256, %s30_s19, [#allocation6], %s410_s23, %s410_s23, %s411_s24  }
   0x6   :  { %s19_s26 = sshll.u32 %s412_s25, 4  ;;  %s40_s29 = sshll.u32 %s475_s2, 4  ;;  %s20_s26 = int_to_ptr.vmem [resolvable:$true] %s19_s26  ;;  %s41_s29 = int_to_ptr.hbm [resolvable:$true] %s40_s29 }
   0x7   :  { %22 = dma.hbm_to_vmem [thread:$0]  %s18_s22, 32, %s20_s26, [#allocation3]  }
   0x8   :  { %s413_s1 = smov [#allocation7]  }
   0x9   :  { %s42_s30 = sshll.u32 %s413_s1, 4  ;;  %s43_s30 = int_to_ptr.vmem [resolvable:$true] %s42_s30 }
   0xa   :  { %48 = dma.hbm_to_vmem [thread:$0]  %s41_s29, 512, %s43_s30, [#allocation6], %s410_s23, %s410_s23, %s411_s24  }
   0xb   :  { %403 = dma.done.wait [#allocation3], 32  }
   0xc   :  { %404 = vsyncadd [#allocation3], 4294967264 }
   0xd   :  { %405 = dma.done.wait [#allocation6], 768  }
   0xe   :  { %406 = vsyncadd [#allocation6], 4294966528  ;;  %v68_v0 = vld [vmem:[#allocation7 + $0x18] sm:$0xff]  ;;  %v67_v1 = vld [vmem:[#allocation7 + $0x10] sm:$0xff]  ;;  %vm69_vm0 = vcmask 261120   ;;  %v124_v22 = vlaneseq  ;;  %vm128_vm1 = vcmask 1041409  }
   0xf   :  { %88 = vmatpush.msra.mxu0 %v68_v0  ;;  %280 = vmatpush.msra.mxu3 %v68_v0  ;;  %v63_v2 = vld [vmem:[#allocation5] sm:$0xff]  ;;  %v64_v3 = vld [vmem:[#allocation5 + $0x8] sm:$0xff]  ;;  %v66_v4 = vld [vmem:[#allocation7 + $0x8] sm:$0xff]  ;;  %vm131_vm2 = vcmask 58368   ;;  %v414_v29 = vmov 0   ;;  %vm201_vm11 = vcmask 64512  }
  0x10   :  { %219 = vmatpush.msra.mxu1 %v63_v2  ;;  %246 = vmatpush.msra.mxu2 %v64_v3  ;;  %v65_v5 = vld [vmem:[#allocation7] sm:$0xff]  ;;  %v99_v6 = vld [vmem:[#allocation2] sm:$0x3]  ;;  %v457_v23 = vand.u32 127, %v124_v22  ;;  %s265_s8 = sshll.u32 %s477_s4, 4  ;;  %vm256_vm12 = vcmask 254976   ;;  %s266_s8 = int_to_ptr.hbm [resolvable:$true] %s265_s8 }
  0x11   :  { %89 = vmatpush.msra.mxu0 %v67_v1  ;;  %281 = vmatpush.msra.mxu3 %v67_v1  ;;  %v102_v7 = vperm.slane %v99_v6, 0  ;;  %v101_v8 = vrot.slane %v99_v6, 1  ;;  %v294_v13 = vld [vmem:[%s476_s3] ss:$0 sm:$0xff]  ;;  %s415_s3 = smov [#allocation8]  }
  0x12   :  { %292 = vset.pattern.permute.xlu2 %v414_v29  ;;  %291 = vset.pattern.permute.xlu1 %v414_v29  ;;  %s263_s5 = sshll.u32 %s415_s3, 4  ;;  %s264_s5 = int_to_ptr.vmem [resolvable:$true] %s263_s5 }
  0x13   :  { %90 = vmatpush.msra.mxu0 %v66_v4  ;;  %282 = vmatpush.msra.mxu3 %v66_v4  ;;  %v103_v11 = vperm.slane %v101_v8, 0 }
  0x14   :  { %293 = vset.pattern.permute.xlu0 %v414_v29 }
  0x15   :  { %91 = vmatpush.msra.mxu0 %v65_v5  ;;  %283 = vmatpush.msra.mxu3 %v65_v5 }
  0x16   :  { %276 = vmatmul.msk.f32.vlgmr.msra.gmra.mxu0 %vm69_vm0, %v63_v2  ;;  %277 = vmatmul.msk.f32.vlgmr.msra.gmra.mxu3 %vm69_vm0, %v64_v3 }
  0x93   :  { %v93_v9 = vpop.f32.mrf.mxu0 }
  0x94   :  { %v106_v10 = vadd.f32 %v102_v7, %v93_v9 }
  0x96   :  { %295 = vtanh.f32 %v106_v10 }
  0x99   :  { %v96_v12 = vpop.f32.mrf.mxu3 }
  0x9a   :  { %v107_v14 = vadd.f32 %v103_v11, %v96_v12 }
  0x9c   :  { %v296_v15 = vpop.eup %295  ;;  %297 = vtanh.f32 %v107_v14 }
  0x9d   :  { %v114_v16 = vmul.f32 %v296_v15, %v294_v13 }
  0x9f   :  { %v116_v17 = vsel %vm69_vm0, %v114_v16, 0.0 }
  0xa0   :  { %117 = vadd.xlane.f32.xlu0 %v116_v17 }
  0xa2   :  { %v298_v18 = vpop.eup %297 }
  0xa3   :  { %v115_v19 = vmul.f32 %v298_v18, %v294_v13 }
  0xa5   :  { %v119_v20 = vsel %vm69_vm0, %v115_v19, 0.0 }
  0xa8   :  { %120 = vadd.xlane.f32.xlu0 %v119_v20 }
 0x113   :  { %v118_v21 = vpop.xlane.xlu0 %117 }
 0x114   :  { %v126_v25 = vperm.slane %v118_v21, %v457_v23 }
 0x11b   :  { %v121_v24 = vpop.xlane.xlu0 %120 }
 0x11c   :  { %v127_v26 = vperm.slane %v121_v24, %v457_v23 }
 0x11e   :  { %v129_v27 = vsel %vm128_vm1, %v127_v26, %v126_v25 }
 0x11f   :  { %v132_v28 = vsel %vm131_vm2, %v129_v27, -inf }
 0x120   :  { %133 = vmax.xlane.f32.xlu1 %v132_v28 }
 0x193   :  { %v134_v30 = vpop.xlane.xlu1 %133 }
 0x194   :  { %v136_v31 = vperm.slane %v134_v30, 0  ;;  %v137_v32 = vperm.slane %v134_v30, 1 }
 0x196   :  { %v140_v33 = vsub.f32 %v118_v21, %v136_v31  ;;  %v141_v34 = vsub.f32 %v121_v24, %v137_v32 }
 0x198   :  { %v142_v35 = vmul.f32 1.442695, %v140_v33  ;;  %v144_v36 = vmul.f32 1.442695, %v141_v34 }
 0x19a   :  { %299 = vpow2.f32 %v142_v35 }
 0x19b   :  { %301 = vpow2.f32 %v144_v36 }
 0x1a0   :  { %v300_v37 = vpop.eup %299 }
 0x1a1   :  { %v302_v38 = vpop.eup %301  ;;  %149 = vperm.xlu1 %291, %v300_v37  }
 0x1a2   :  { %152 = vperm.xlu2 %292, %v302_v38  }
 0x1fc   :  { %v153_v39 = vpop.permute.xlu2 %152 }
 0x1fd   :  { %v155_v41 = vperm.slane %v153_v39, %v457_v23 }
 0x213   :  { %v150_v40 = vpop.permute.xlu1 %149 }
 0x214   :  { %v154_v42 = vperm.slane %v150_v40, %v457_v23 }
 0x216   :  { %v156_v43 = vsel %vm128_vm1, %v155_v41, %v154_v42 }
 0x217   :  { %v158_v44 = vsel %vm131_vm2, %v156_v43, 0.0 }
 0x218   :  { %159 = vadd.xlane.f32.xlu2 %v158_v44 }
 0x28b   :  { %v160_v45 = vpop.xlane.xlu2 %159 }
 0x28c   :  { %v162_v46 = vperm.slane %v160_v45, 0  ;;  %v163_v47 = vperm.slane %v160_v45, 1 }
 0x28e   :  { %303 = vrcp.f32 %v162_v46  ;;  %v177_v54 = vand.u32 2147483648, %v162_v46  ;;  %v192_v55 = vand.u32 2147483648, %v163_v47  ;;  %v175_v57 = vand.u32 2147483647, %v162_v46 }
 0x28f   :  { %305 = vrcp.f32 %v163_v47  ;;  %v190_v59 = vand.u32 2147483647, %v163_v47  ;;  %vm171_vm5 = vweird.f32 %v162_v46  ;;  %vm186_vm6 = vweird.f32 %v163_v47 }
 0x290   :  { %v178_v62 = vor.u32 1.1754944e-38, %v177_v54  ;;  %v193_v63 = vor.u32 1.1754944e-38, %v192_v55  ;;  %vm176_vm9 = vcmp.eq.f32.partialorder %v175_v57, 8.507059e+37 }
 0x291   :  { %vm191_vm10 = vcmp.eq.f32.partialorder %v190_v59, 8.507059e+37 }
 0x294   :  { %v304_v48 = vpop.eup %303 }
 0x295   :  { %v306_v49 = vpop.eup %305  ;;  %v167_v50 = vmul.f32 %v304_v48, %v162_v46  ;;  %vm172_vm3 = vweird.f32 %v304_v48 }
 0x296   :  { %v182_v51 = vmul.f32 %v306_v49, %v163_v47  ;;  %vm187_vm4 = vweird.f32 %v306_v49  ;;  %vm173_vm7 = vmor %vm171_vm5, %vm172_vm3 }
 0x297   :  { %v168_v52 = vsub.f32 1.0, %v167_v50  ;;  %vm188_vm8 = vmor %vm186_vm6, %vm187_vm4 }
 0x298   :  { %v183_v53 = vsub.f32 1.0, %v182_v51 }
 0x299   :  { %v169_v56 = vmul.f32 %v304_v48, %v168_v52 }
 0x29a   :  { %v184_v58 = vmul.f32 %v306_v49, %v183_v53 }
 0x29b   :  { %v170_v60 = vadd.f32 %v304_v48, %v169_v56 }
 0x29c   :  { %v185_v61 = vadd.f32 %v306_v49, %v184_v58 }
 0x29d   :  { %v174_v0 = vsel %vm173_vm7, %v304_v48, %v170_v60 }
 0x29e   :  { %v189_v1 = vsel %vm188_vm8, %v306_v49, %v185_v61  ;;  %v179_v2 = vsel %vm176_vm9, %v178_v62, %v174_v0 }
 0x29f   :  { %v194_v3 = vsel %vm191_vm10, %v193_v63, %v189_v1  ;;  %v180_v4 = vmul.f32 %v300_v37, %v179_v2 }
 0x2a0   :  { %v195_v5 = vmul.f32 %v302_v38, %v194_v3 }
 0x2a1   :  { %198 = vperm.xlu1 %291, %v180_v4  }
 0x2a2   :  { %226 = vperm.xlu0 %293, %v195_v5  }
 0x313   :  { %v199_v6 = vpop.permute.xlu1 %198 }
 0x314   :  { %v227_v7 = vpop.permute.xlu0 %226  ;;  %v200_v8 = vperm.slane %v199_v6, %v457_v23 }
 0x315   :  { %v228_v9 = vperm.slane %v227_v7, %v457_v23 }
 0x316   :  { %278 = vmatmul.msk.f32.vlgmr.msra.gmra.mxu1 %vm201_vm11, %v200_v8 }
 0x317   :  { %279 = vmatmul.msk.f32.vlgmr.msra.gmra.mxu2 %vm201_vm11, %v228_v9 }
 0x393   :  { %v221_v12 = vpop.f32.mrf.mxu1 }
 0x39a   :  { %v248_v10 = vpop.f32.mrf.mxu2 }
 0x39b   :  { %v253_v11 = vrot.slane %v248_v10, 7 }
 0x39d   :  { %v254_v13 = vsel %vm128_vm1, %v253_v11, %v221_v12 }
 0x39e   :  { %257 = vst.msk [vmem:[#allocation8] sm:$0x3] %vm256_vm12, %v254_v13 }
 0x39f   :  { %268 = dma.vmem_to_hbm [thread:$0]  %s264_s5, 32, %s266_s8, [#allocation4]  }
 0x3a0   :  { %407 = dma.done.wait [#allocation4], 32  }
 0x3a1   :  { %408 = vsyncadd [#allocation4], 4294967264 }
 0x3a2   :  { %273 = vsyncpa [#allocation3], 1 }
 0x3a3   :  { %274 = vsyncpa [#allocation6], 1 }
 0x3a4   :  { %275 = vsyncpa [#allocation4], 1 }

</bundles_post_ra>
